<compile_context>
chip_gen: v6e
topology: v6e:2x2x1
jax: 0.10.0
libtpu: 0.0.40
codegen_flags: <defaults>
</compile_context>

<pallas_src>
import functools

import jax
import jax.numpy as jnp
from jax import lax
from jax.experimental import pallas as pl
from jax.experimental.pallas import tpu as pltpu


# ----------------------------------------------------------------------------
# Kernel: one layer, both LSTM directions, time chunked inside the kernel.
# refs: x (K, Tc*B, Din) | w_ih (1, K, Din, 4H) | w_hh (1, H, 4H) | b (1, 1, 4H)
# out : (1, Tc, B, H)
# scratch: gx (Tc*B, 4H) f32, h (B, H) f32, c (B, H) f32  (h/c carried across chunks)
# ----------------------------------------------------------------------------
def _bilstm_layer_kernel(x_ref, wih_ref, whh_ref, b_ref, out_ref,
                         gx_ref, h_scr, c_scr, *, tc, batch, hidden, k_parts):
    d = pl.program_id(0)          # direction: 0 = forward, 1 = backward
    c = pl.program_id(1)          # chunk index in traversal order of direction d

    @pl.when(c == 0)
    def _():
        h_scr[...] = jnp.zeros_like(h_scr)
        c_scr[...] = jnp.zeros_like(c_scr)

    # Hoisted input projection for the whole chunk: one big MXU matmul per
    # k-part (k_parts == 1 for the raw input, 2 for the previous layer's
    # forward/backward halves).  Result lives in VMEM, never touches HBM.
    acc = jnp.dot(x_ref[0], wih_ref[0, 0], preferred_element_type=jnp.float32)
    for k in range(1, k_parts):
        acc = acc + jnp.dot(x_ref[k], wih_ref[0, k],
                            preferred_element_type=jnp.float32)
    gx_ref[...] = acc + b_ref[0]

    whh = whh_ref[0]              # (H, 4H)
    H = hidden
    B = batch
    out_view = out_ref.at[0]      # (Tc, B, H) view, zero-cost

    def step(s, carry):
        h, c_state = carry
        # local time index within the chunk (reversed for the backward pass)
        t = s + d * (tc - 1 - 2 * s)
        row = pl.multiple_of(t * B, B)
        g = gx_ref[pl.ds(row, B), :] + jnp.dot(
            h.astype(whh.dtype), whh, preferred_element_type=jnp.float32)
        i_g = jax.nn.sigmoid(g[:, 0 * H:1 * H])
        f_g = jax.nn.sigmoid(g[:, 1 * H:2 * H])
        g_g = jnp.tanh(g[:, 2 * H:3 * H])
        o_g = jax.nn.sigmoid(g[:, 3 * H:4 * H])
        c_new = f_g * c_state + i_g * g_g
        h_new = o_g * jnp.tanh(c_new)
        out_view[t] = h_new.astype(out_ref.dtype)
        return (h_new, c_new)

    h_last, c_last = lax.fori_loop(0, tc, step, (h_scr[...], c_scr[...]))
    h_scr[...] = h_last
    c_scr[...] = c_last


def _choose_time_chunk(T, B, cap=128):
    """Largest chunk <= cap that divides T and keeps the (8,128) block rule."""
    if T <= cap:
        return T
    for tc in range(cap, 0, -1):
        if T % tc == 0 and (tc * B) % 8 == 0:
            return tc
    return T   # fall back to a single chunk (may be VMEM-heavy for huge T)


def _bilstm_layer(x_rows, wih, whh, bias, *, seq_len, batch, hidden, time_chunk):
    """x_rows: (K, T*B, Din) time-major rows; returns (2, T, B, H)."""
    k_parts, total_rows, d_in = x_rows.shape
    assert total_rows == seq_len * batch
    tc = time_chunk
    nc = seq_len // tc
    kernel = functools.partial(_bilstm_layer_kernel, tc=tc, batch=batch,
                               hidden=hidden, k_parts=k_parts)

    def chunk_idx(d, c):
        # forward walks time-chunks 0..nc-1; backward walks nc-1..0
        return c + d * (nc - 1 - 2 * c)

    return pl.pallas_call(
        kernel,
        out_shape=jax.ShapeDtypeStruct((2, seq_len, batch, hidden), jnp.float32),
        grid_spec=pltpu.PrefetchScalarGridSpec(
            num_scalar_prefetch=0,
            grid=(2, nc),
            in_specs=[
                pl.BlockSpec((k_parts, tc * batch, d_in),
                             lambda d, c: (0, chunk_idx(d, c), 0)),
                pl.BlockSpec((1, k_parts, d_in, 4 * hidden),
                             lambda d, c: (d, 0, 0, 0)),
                pl.BlockSpec((1, hidden, 4 * hidden),
                             lambda d, c: (d, 0, 0)),
                pl.BlockSpec((1, 1, 4 * hidden),
                             lambda d, c: (d, 0, 0)),
            ],
            out_specs=pl.BlockSpec((1, tc, batch, hidden),
                                   lambda d, c: (d, chunk_idx(d, c), 0, 0)),
            scratch_shapes=[
                pltpu.VMEM((tc * batch, 4 * hidden), jnp.float32),
                pltpu.VMEM((batch, hidden), jnp.float32),
                pltpu.VMEM((batch, hidden), jnp.float32),
            ],
        ),
        compiler_params=pltpu.CompilerParams(
            dimension_semantics=("parallel", "arbitrary")),
    )(x_rows, wih, whh, bias)


# ----------------------------------------------------------------------------
# StackedBRNN forward (the _forward_unpadded path).
# ----------------------------------------------------------------------------
def stacked_brnn_forward(params, x, x_mask, *, concat_layers=False,
                         time_chunk=None, compute_dtype=jnp.float32):
    """x: (B, T, D) float32, x_mask: (B, T) (ignored: unpadded path only)."""
    del x_mask
    B, T, D = x.shape
    tc = time_chunk if time_chunk is not None else _choose_time_chunk(T, B)
    assert T % tc == 0 and (tc == T or (tc * B) % 8 == 0), (T, B, tc)

    # One transpose of the raw input to seq-major flattened rows (t-major).
    inp = jnp.transpose(x, (1, 0, 2)).reshape(1, T * B, D).astype(compute_dtype)

    layer_outs = []
    for lp in params:
        hidden = lp["w_hh"].shape[1]          # w_hh: (4H, H)
        k_parts, _, d_in = inp.shape
        wih = jnp.stack([
            jnp.transpose(lp["w_ih"]).reshape(k_parts, d_in, 4 * hidden),
            jnp.transpose(lp["w_ih_r"]).reshape(k_parts, d_in, 4 * hidden),
        ]).astype(compute_dtype)                               # (2, K, Din, 4H)
        whh = jnp.stack([jnp.transpose(lp["w_hh"]),
                         jnp.transpose(lp["w_hh_r"])]).astype(compute_dtype)
        bias = jnp.stack([
            (lp["b_ih"] + lp["b_hh"]).reshape(1, 4 * hidden),
            (lp["b_ih_r"] + lp["b_hh_r"]).reshape(1, 4 * hidden),
        ]).astype(jnp.float32)                                 # (2, 1, 4H)

        out = _bilstm_layer(inp, wih, whh, bias, seq_len=T, batch=B,
                            hidden=hidden, time_chunk=tc)      # (2, T, B, H)
        layer_outs.append(out)
        # Next layer consumes the (fwd, bwd) halves directly — free reshape,
        # no per-layer concatenate / extra HBM pass.
        inp = out.reshape(2, T * B, hidden).astype(compute_dtype)

    def to_batch_major(o):   # (2, T, B, H) -> (B, T, 2H)
        return jnp.transpose(jnp.concatenate([o[0], o[1]], axis=-1), (1, 0, 2))

    if concat_layers:
        return jnp.concatenate([to_batch_major(o) for o in layer_outs], axis=-1)
    return to_batch_major(layer_outs[-1])


# ----------------------------------------------------------------------------
# Pure-JAX reference (lax.scan LSTM) for correctness checking.
# ----------------------------------------------------------------------------
def _lstm_ref_direction(x_tbd, w_ih, w_hh, bias, *, reverse):
    T, B, D = x_tbd.shape
    H = w_hh.shape[1]
    xs = x_tbd[::-1] if reverse else x_tbd

    def step(carry, x_t):
        h, c = carry
        gates = x_t @ w_ih.T + h @ w_hh.T + bias
        i_g = jax.nn.sigmoid(gates[:, 0 * H:1 * H])
        f_g = jax.nn.sigmoid(gates[:, 1 * H:2 * H])
        g_g = jnp.tanh(gates[:, 2 * H:3 * H])
        o_g = jax.nn.sigmoid(gates[:, 3 * H:4 * H])
        c_new = f_g * c + i_g * g_g
        h_new = o_g * jnp.tanh(c_new)
        return (h_new, c_new), h_new

    init = (jnp.zeros((B, H), jnp.float32), jnp.zeros((B, H), jnp.float32))
    _, hs = lax.scan(step, init, xs)
    return hs[::-1] if reverse else hs


def stacked_brnn_reference(params, x, x_mask, *, concat_layers=False):
    del x_mask
    x_t = jnp.transpose(x, (1, 0, 2))
    outputs = []
    inp = x_t
    for layer in params:
        out_f = _lstm_ref_direction(inp, layer["w_ih"], layer["w_hh"],
                                    layer["b_ih"] + layer["b_hh"], reverse=False)
        out_b = _lstm_ref_direction(inp, layer["w_ih_r"], layer["w_hh_r"],
                                    layer["b_ih_r"] + layer["b_hh_r"], reverse=True)
        out = jnp.concatenate([out_f, out_b], axis=-1)
        outputs.append(out)
        inp = out
    output = jnp.concatenate(outputs, axis=-1) if concat_layers else outputs[-1]
    return jnp.transpose(output, (1, 0, 2))


# ----------------------------------------------------------------------------
# Deterministic parameter init (PyTorch LSTM shapes: weight_ih (4H, D_in),
# weight_hh (4H, H), biases (4H,), plus the *_reverse set per layer).
# ----------------------------------------------------------------------------
def init_params(key, input_size, hidden_size, num_layers):
    params = []
    bound = 1.0 / jnp.sqrt(hidden_size)
    for i in range(num_layers):
        d_in = input_size if i == 0 else 2 * hidden_size
        layer = {}
        for name, shape in [
            ("w_ih", (4 * hidden_size, d_in)),
            ("w_hh", (4 * hidden_size, hidden_size)),
            ("b_ih", (4 * hidden_size,)),
            ("b_hh", (4 * hidden_size,)),
            ("w_ih_r", (4 * hidden_size, d_in)),
            ("w_hh_r", (4 * hidden_size, hidden_size)),
            ("b_ih_r", (4 * hidden_size,)),
            ("b_hh_r", (4 * hidden_size,)),
        ]:
            key, sub = jax.random.split(key)
            layer[name] = jax.random.uniform(
                sub, shape, jnp.float32, minval=-bound, maxval=bound)
        params.append(layer)
    return params


if __name__ == "__main__":
    B, T, D, H, L = 2, 8, 16, 32, 2

    key = jax.random.PRNGKey(0)
    key, kx = jax.random.split(key)
    x = jax.random.normal(kx, (B, T, D), jnp.float32)
    x_mask = jnp.zeros((B, T), jnp.int32)     # mask.sum()==0 -> unpadded path
    params = init_params(key, D, H, L)

    fwd = jax.jit(stacked_brnn_forward,
                  static_argnames=("concat_layers", "time_chunk", "compute_dtype"))

    # Single-chunk path.
    out = jax.block_until_ready(fwd(params, x, x_mask))
    assert out.shape == (B, T, 2 * H), out.shape
    ref = jax.block_until_ready(
        stacked_brnn_reference(params, x, x_mask, concat_layers=False))
    err = float(jnp.max(jnp.abs(out - ref)))
    assert jnp.allclose(out, ref, atol=1e-4, rtol=1e-4), err

    # Multi-chunk path (exercises carried h/c across time chunks + concat_layers).
    T2 = 16
    key, kx2 = jax.random.split(key)
    x2 = jax.random.normal(kx2, (B, T2, D), jnp.float32)
    mask2 = jnp.zeros((B, T2), jnp.int32)
    out2 = jax.block_until_ready(
        fwd(params, x2, mask2, concat_layers=True, time_chunk=8))
    assert out2.shape == (B, T2, L * 2 * H), out2.shape
    ref2 = jax.block_until_ready(
        stacked_brnn_reference(params, x2, mask2, concat_layers=True))
    err2 = float(jnp.max(jnp.abs(out2 - ref2)))
    assert jnp.allclose(out2, ref2, atol=1e-4, rtol=1e-4), err2

    print("KERNEL_OK")
</pallas_src>

<mosaic_0001>
module attributes {stable_mosaic.version = 11 : i64} {
  func.func @_bilstm_layer_kernel(%arg0: i32, %arg1: i32, %arg2: memref<1x16x16xf32, #tpu.memory_space<vmem>>, %arg3: memref<1x1x16x128xf32, #tpu.memory_space<vmem>>, %arg4: memref<1x32x128xf32, #tpu.memory_space<vmem>>, %arg5: memref<1x1x128xf32, #tpu.memory_space<vmem>>, %arg6: memref<1x8x2x32xf32, #tpu.memory_space<vmem>>, %arg7: memref<16x128xf32, #tpu.memory_space<vmem>>, %arg8: memref<2x32xf32, #tpu.memory_space<vmem>>, %arg9: memref<2x32xf32, #tpu.memory_space<vmem>>) attributes {dimension_semantics = [#tpu.dimension_semantics<parallel>, #tpu.dimension_semantics<arbitrary>], iteration_bounds = array<i64: 2, 1>, scalar_prefetch = 0 : i64, scratch_operands = 3 : i64, tpu.core_type = #tpu.core_type<tc>, window_params = [{transform_indices = @transform_0, window_bounds = array<i64: 1, 16, 16>}, {transform_indices = @transform_1, window_bounds = array<i64: 1, 1, 16, 128>}, {transform_indices = @transform_2, window_bounds = array<i64: 1, 32, 128>}, {transform_indices = @transform_3, window_bounds = array<i64: 1, 1, 128>}, {transform_indices = @transform_4, window_bounds = array<i64: 1, 8, 2, 32>}]} {
    %c0_i32 = arith.constant 0 : i32
    %0 = arith.cmpi eq, %arg1, %c0_i32 : i32
    %1 = arith.extui %0 : i1 to i32
    %c0_i32_0 = arith.constant 0 : i32
    %2 = arith.cmpi ne, %1, %c0_i32_0 : i32
    scf.if %2 {
      %cst_26 = arith.constant 0.000000e+00 : f32
      %21 = vector.broadcast %cst_26 : f32 to vector<2x32xf32>
      %c0_27 = arith.constant 0 : index
      %c0_28 = arith.constant 0 : index
      %22 = vector.load %arg8[%c0_27, %c0_28] : memref<2x32xf32, #tpu.memory_space<vmem>>, vector<2x32xf32>
      tpu.vector_store %arg8[%c0_27, %c0_28], %21 {strides = array<i32>} : memref<2x32xf32, #tpu.memory_space<vmem>>, vector<2x32xf32>,
      %cst_29 = arith.constant 0.000000e+00 : f32
      %23 = vector.broadcast %cst_29 : f32 to vector<2x32xf32>
      %c0_30 = arith.constant 0 : index
      %c0_31 = arith.constant 0 : index
      %24 = vector.load %arg9[%c0_30, %c0_31] : memref<2x32xf32, #tpu.memory_space<vmem>>, vector<2x32xf32>
      tpu.vector_store %arg9[%c0_30, %c0_31], %23 {strides = array<i32>} : memref<2x32xf32, #tpu.memory_space<vmem>>, vector<2x32xf32>,
    } else {
    }
    %c0 = arith.constant 0 : index
    %c0_1 = arith.constant 0 : index
    %c0_2 = arith.constant 0 : index
    %3 = vector.load %arg2[%c0, %c0_1, %c0_2] : memref<1x16x16xf32, #tpu.memory_space<vmem>>, vector<1x16x16xf32>
    %4 = vector.shape_cast %3 : vector<1x16x16xf32> to vector<16x16xf32>
    %c0_3 = arith.constant 0 : index
    %c0_4 = arith.constant 0 : index
    %c0_5 = arith.constant 0 : index
    %c0_6 = arith.constant 0 : index
    %5 = vector.load %arg3[%c0_3, %c0_4, %c0_5, %c0_6] : memref<1x1x16x128xf32, #tpu.memory_space<vmem>>, vector<1x1x16x128xf32>
    %6 = vector.shape_cast %5 : vector<1x1x16x128xf32> to vector<16x128xf32>
    %cst = arith.constant dense<0.000000e+00> : vector<16x128xf32>
    %7 = tpu.matmul %4, %6, %cst {dimension_numbers = #tpu.dot_dimension_numbers<[1], [0], [0], [1], [0, 0, 1, 1], [], []>} : vector<16x16xf32>, vector<16x128xf32>, vector<16x128xf32> -> vector<16x128xf32>
    %c0_7 = arith.constant 0 : index
    %c0_8 = arith.constant 0 : index
    %c0_9 = arith.constant 0 : index
    %8 = vector.load %arg5[%c0_7, %c0_8, %c0_9] : memref<1x1x128xf32, #tpu.memory_space<vmem>>, vector<1x1x128xf32>
    %9 = vector.shape_cast %8 : vector<1x1x128xf32> to vector<1x128xf32>
    %10 = vector.broadcast %9 : vector<1x128xf32> to vector<16x128xf32>
    %11 = arith.addf %7, %10 : vector<16x128xf32>
    %c0_10 = arith.constant 0 : index
    %c0_11 = arith.constant 0 : index
    %12 = vector.load %arg7[%c0_10, %c0_11] : memref<16x128xf32, #tpu.memory_space<vmem>>, vector<16x128xf32>
    tpu.vector_store %arg7[%c0_10, %c0_11], %11 {strides = array<i32>} : memref<16x128xf32, #tpu.memory_space<vmem>>, vector<16x128xf32>,
    %c0_12 = arith.constant 0 : index
    %c0_13 = arith.constant 0 : index
    %c0_14 = arith.constant 0 : index
    %13 = vector.load %arg4[%c0_12, %c0_13, %c0_14] : memref<1x32x128xf32, #tpu.memory_space<vmem>>, vector<1x32x128xf32>
    %14 = vector.shape_cast %13 : vector<1x32x128xf32> to vector<32x128xf32>
    %c0_15 = arith.constant 0 : index
    %c0_16 = arith.constant 0 : index
    %15 = vector.load %arg8[%c0_15, %c0_16] : memref<2x32xf32, #tpu.memory_space<vmem>>, vector<2x32xf32>
    %c0_17 = arith.constant 0 : index
    %c0_18 = arith.constant 0 : index
    %16 = vector.load %arg9[%c0_17, %c0_18] : memref<2x32xf32, #tpu.memory_space<vmem>>, vector<2x32xf32>
    %c0_i32_19 = arith.constant 0 : i32
    %c0_i32_20 = arith.constant 0 : i32
    %c8_i32 = arith.constant 8 : i32
    %17 = arith.addi %c0_i32_20, %c8_i32 : i32
    %c1_i32 = arith.constant 1 : i32
    %18:2 = scf.for %arg10 = %c0_i32_20 to %17 step %c1_i32 iter_args(%arg11 = %15, %arg12 = %16) -> (vector<2x32xf32>, vector<2x32xf32>)  : i32 {
      %c2_i32 = arith.constant 2 : i32
      %21 = arith.muli %c2_i32, %arg10 : i32
      %c7_i32 = arith.constant 7 : i32
      %22 = arith.subi %c7_i32, %21 : i32
      %23 = arith.muli %arg0, %22 : i32
      %24 = arith.addi %arg10, %23 : i32
      %c2_i32_26 = arith.constant 2 : i32
      %25 = arith.muli %24, %c2_i32_26 : i32
      %26 = tpu.assume_multiple %25, 2 : i32
      %27 = arith.index_cast %26 : i32 to index
      %c0_27 = arith.constant 0 : index
      %28 = vector.load %arg7[%27, %c0_27] : memref<16x128xf32, #tpu.memory_space<vmem>>, vector<2x128xf32>
      %cst_28 = arith.constant dense<0.000000e+00> : vector<2x128xf32>
      %29 = tpu.matmul %arg11, %14, %cst_28 {dimension_numbers = #tpu.dot_dimension_numbers<[1], [0], [0], [1], [0, 0, 1, 1], [], []>} : vector<2x32xf32>, vector<32x128xf32>, vector<2x128xf32> -> vector<2x128xf32>
      %30 = arith.addf %28, %29 : vector<2x128xf32>
      %31 = vector.extract_strided_slice %30 {offsets = [0, 0], sizes = [2, 32], strides = [1, 1]} : vector<2x128xf32> to vector<2x32xf32>
      %32 = arith.negf %31 : vector<2x32xf32>
      %33 = math.exp %32 : vector<2x32xf32>
      %cst_29 = arith.constant 1.000000e+00 : f32
      %34 = vector.broadcast %cst_29 : f32 to vector<2x32xf32>
      %35 = arith.addf %34, %33 : vector<2x32xf32>
      %36 = arith.divf %34, %35 : vector<2x32xf32>
      %37 = vector.extract_strided_slice %30 {offsets = [0, 32], sizes = [2, 32], strides = [1, 1]} : vector<2x128xf32> to vector<2x32xf32>
      %38 = arith.negf %37 : vector<2x32xf32>
      %39 = math.exp %38 : vector<2x32xf32>
      %cst_30 = arith.constant 1.000000e+00 : f32
      %40 = vector.broadcast %cst_30 : f32 to vector<2x32xf32>
      %41 = arith.addf %40, %39 : vector<2x32xf32>
      %42 = arith.divf %40, %41 : vector<2x32xf32>
      %43 = vector.extract_strided_slice %30 {offsets = [0, 64], sizes = [2, 32], strides = [1, 1]} : vector<2x128xf32> to vector<2x32xf32>
      %44 = math.tanh %43 : vector<2x32xf32>
      %45 = vector.extract_strided_slice %30 {offsets = [0, 96], sizes = [2, 32], strides = [1, 1]} : vector<2x128xf32> to vector<2x32xf32>
      %46 = arith.negf %45 : vector<2x32xf32>
      %47 = math.exp %46 : vector<2x32xf32>
      %cst_31 = arith.constant 1.000000e+00 : f32
      %48 = vector.broadcast %cst_31 : f32 to vector<2x32xf32>
      %49 = arith.addf %48, %47 : vector<2x32xf32>
      %50 = arith.divf %48, %49 : vector<2x32xf32>
      %51 = arith.mulf %42, %arg12 : vector<2x32xf32>
      %52 = arith.mulf %36, %44 : vector<2x32xf32>
      %53 = arith.addf %51, %52 : vector<2x32xf32>
      %54 = math.tanh %53 : vector<2x32xf32>
      %55 = arith.mulf %50, %54 : vector<2x32xf32>
      %c0_i32_32 = arith.constant 0 : i32
      %c0_i32_33 = arith.constant 0 : i32
      %c0_i32_34 = arith.constant 0 : i32
      %56 = tpu.memref_slice %arg6[%c0_i32_19, %c0_i32_32, %c0_i32_33, %c0_i32_34] : memref<1x8x2x32xf32, #tpu.memory_space<vmem>> -> memref<1x8x2x32xf32, #tpu.memory_space<vmem>>
      %57 = tpu.memref_squeeze %56 : memref<1x8x2x32xf32, #tpu.memory_space<vmem>> -> memref<8x2x32xf32, #tpu.memory_space<vmem>>
      %58 = arith.index_cast %24 : i32 to index
      %c0_35 = arith.constant 0 : index
      %c0_36 = arith.constant 0 : index
      %59 = vector.load %57[%58, %c0_35, %c0_36] : memref<8x2x32xf32, #tpu.memory_space<vmem>>, vector<1x2x32xf32>
      %60 = vector.shape_cast %59 : vector<1x2x32xf32> to vector<2x32xf32>
      %61 = vector.shape_cast %55 : vector<2x32xf32> to vector<1x2x32xf32>
      tpu.vector_store %57[%58, %c0_35, %c0_36], %61 {strides = array<i32>} : memref<8x2x32xf32, #tpu.memory_space<vmem>>, vector<1x2x32xf32>,
      scf.yield %55, %53 : vector<2x32xf32>, vector<2x32xf32>
    }
    %c8_i32_21 = arith.constant 8 : i32
    %c0_22 = arith.constant 0 : index
    %c0_23 = arith.constant 0 : index
    %19 = vector.load %arg8[%c0_22, %c0_23] : memref<2x32xf32, #tpu.memory_space<vmem>>, vector<2x32xf32>
    tpu.vector_store %arg8[%c0_22, %c0_23], %18#0 {strides = array<i32>} : memref<2x32xf32, #tpu.memory_space<vmem>>, vector<2x32xf32>,
    %c0_24 = arith.constant 0 : index
    %c0_25 = arith.constant 0 : index
    %20 = vector.load %arg9[%c0_24, %c0_25] : memref<2x32xf32, #tpu.memory_space<vmem>>, vector<2x32xf32>
    tpu.vector_store %arg9[%c0_24, %c0_25], %18#1 {strides = array<i32>} : memref<2x32xf32, #tpu.memory_space<vmem>>, vector<2x32xf32>,
    return
  }
  func.func @transform_0(%arg0: i32, %arg1: i32) -> (i32, i32, i32) {
    %c2_i32 = arith.constant 2 : i32
    %0 = arith.muli %c2_i32, %arg1 : i32
    %c0_i32 = arith.constant 0 : i32
    %1 = arith.subi %c0_i32, %0 : i32
    %2 = arith.muli %arg0, %1 : i32
    %3 = arith.addi %arg1, %2 : i32
    %c0_i32_0 = arith.constant 0 : i32
    %c0_i32_1 = arith.constant 0 : i32
    %c0_i32_2 = arith.constant 0 : i32
    return %c0_i32_0, %3, %c0_i32_1 : i32, i32, i32
  }
  func.func @transform_1(%arg0: i32, %arg1: i32) -> (i32, i32, i32, i32) {
    %c0_i32 = arith.constant 0 : i32
    %c0_i32_0 = arith.constant 0 : i32
    %c0_i32_1 = arith.constant 0 : i32
    %c0_i32_2 = arith.constant 0 : i32
    return %arg0, %c0_i32, %c0_i32_0, %c0_i32_1 : i32, i32, i32, i32
  }
  func.func @transform_2(%arg0: i32, %arg1: i32) -> (i32, i32, i32) {
    %c0_i32 = arith.constant 0 : i32
    %c0_i32_0 = arith.constant 0 : i32
    %c0_i32_1 = arith.constant 0 : i32
    return %arg0, %c0_i32, %c0_i32_0 : i32, i32, i32
  }
  func.func @transform_3(%arg0: i32, %arg1: i32) -> (i32, i32, i32) {
    %c0_i32 = arith.constant 0 : i32
    %c0_i32_0 = arith.constant 0 : i32
    %c0_i32_1 = arith.constant 0 : i32
    return %arg0, %c0_i32, %c0_i32_0 : i32, i32, i32
  }
  func.func @transform_4(%arg0: i32, %arg1: i32) -> (i32, i32, i32, i32) {
    %c2_i32 = arith.constant 2 : i32
    %0 = arith.muli %c2_i32, %arg1 : i32
    %c0_i32 = arith.constant 0 : i32
    %1 = arith.subi %c0_i32, %0 : i32
    %2 = arith.muli %arg0, %1 : i32
    %3 = arith.addi %arg1, %2 : i32
    %c0_i32_0 = arith.constant 0 : i32
    %c0_i32_1 = arith.constant 0 : i32
    %c0_i32_2 = arith.constant 0 : i32
    return %arg0, %3, %c0_i32_0, %c0_i32_1 : i32, i32, i32, i32
  }
}

module attributes {stable_mosaic.version = 11 : i64} {
  func.func @_bilstm_layer_kernel(%arg0: i32, %arg1: i32, %arg2: memref<2x16x32xf32, #tpu.memory_space<vmem>>, %arg3: memref<1x2x32x128xf32, #tpu.memory_space<vmem>>, %arg4: memref<1x32x128xf32, #tpu.memory_space<vmem>>, %arg5: memref<1x1x128xf32, #tpu.memory_space<vmem>>, %arg6: memref<1x8x2x32xf32, #tpu.memory_space<vmem>>, %arg7: memref<16x128xf32, #tpu.memory_space<vmem>>, %arg8: memref<2x32xf32, #tpu.memory_space<vmem>>, %arg9: memref<2x32xf32, #tpu.memory_space<vmem>>) attributes {dimension_semantics = [#tpu.dimension_semantics<parallel>, #tpu.dimension_semantics<arbitrary>], iteration_bounds = array<i64: 2, 1>, scalar_prefetch = 0 : i64, scratch_operands = 3 : i64, tpu.core_type = #tpu.core_type<tc>, window_params = [{transform_indices = @transform_0, window_bounds = array<i64: 2, 16, 32>}, {transform_indices = @transform_1, window_bounds = array<i64: 1, 2, 32, 128>}, {transform_indices = @transform_2, window_bounds = array<i64: 1, 32, 128>}, {transform_indices = @transform_3, window_bounds = array<i64: 1, 1, 128>}, {transform_indices = @transform_4, window_bounds = array<i64: 1, 8, 2, 32>}]} {
    %c0_i32 = arith.constant 0 : i32
    %0 = arith.cmpi eq, %arg1, %c0_i32 : i32
    %1 = arith.extui %0 : i1 to i32
    %c0_i32_0 = arith.constant 0 : i32
    %2 = arith.cmpi ne, %1, %c0_i32_0 : i32
    scf.if %2 {
      %cst_33 = arith.constant 0.000000e+00 : f32
      %27 = vector.broadcast %cst_33 : f32 to vector<2x32xf32>
      %c0_34 = arith.constant 0 : index
      %c0_35 = arith.constant 0 : index
      %28 = vector.load %arg8[%c0_34, %c0_35] : memref<2x32xf32, #tpu.memory_space<vmem>>, vector<2x32xf32>
      tpu.vector_store %arg8[%c0_34, %c0_35], %27 {strides = array<i32>} : memref<2x32xf32, #tpu.memory_space<vmem>>, vector<2x32xf32>,
      %cst_36 = arith.constant 0.000000e+00 : f32
      %29 = vector.broadcast %cst_36 : f32 to vector<2x32xf32>
      %c0_37 = arith.constant 0 : index
      %c0_38 = arith.constant 0 : index
      %30 = vector.load %arg9[%c0_37, %c0_38] : memref<2x32xf32, #tpu.memory_space<vmem>>, vector<2x32xf32>
      tpu.vector_store %arg9[%c0_37, %c0_38], %29 {strides = array<i32>} : memref<2x32xf32, #tpu.memory_space<vmem>>, vector<2x32xf32>,
    } else {
    }
    %c0 = arith.constant 0 : index
    %c0_1 = arith.constant 0 : index
    %c0_2 = arith.constant 0 : index
    %3 = vector.load %arg2[%c0, %c0_1, %c0_2] : memref<2x16x32xf32, #tpu.memory_space<vmem>>, vector<1x16x32xf32>
    %4 = vector.shape_cast %3 : vector<1x16x32xf32> to vector<16x32xf32>
    %c0_3 = arith.constant 0 : index
    %c0_4 = arith.constant 0 : index
    %c0_5 = arith.constant 0 : index
    %c0_6 = arith.constant 0 : index
    %5 = vector.load %arg3[%c0_3, %c0_4, %c0_5, %c0_6] : memref<1x2x32x128xf32, #tpu.memory_space<vmem>>, vector<1x1x32x128xf32>
    %6 = vector.shape_cast %5 : vector<1x1x32x128xf32> to vector<32x128xf32>
    %cst = arith.constant dense<0.000000e+00> : vector<16x128xf32>
    %7 = tpu.matmul %4, %6, %cst {dimension_numbers = #tpu.dot_dimension_numbers<[1], [0], [0], [1], [0, 0, 1, 1], [], []>} : vector<16x32xf32>, vector<32x128xf32>, vector<16x128xf32> -> vector<16x128xf32>
    %c1 = arith.constant 1 : index
    %c0_7 = arith.constant 0 : index
    %c0_8 = arith.constant 0 : index
    %8 = vector.load %arg2[%c1, %c0_7, %c0_8] : memref<2x16x32xf32, #tpu.memory_space<vmem>>, vector<1x16x32xf32>
    %9 = vector.shape_cast %8 : vector<1x16x32xf32> to vector<16x32xf32>
    %c0_9 = arith.constant 0 : index
    %c1_10 = arith.constant 1 : index
    %c0_11 = arith.constant 0 : index
    %c0_12 = arith.constant 0 : index
    %10 = vector.load %arg3[%c0_9, %c1_10, %c0_11, %c0_12] : memref<1x2x32x128xf32, #tpu.memory_space<vmem>>, vector<1x1x32x128xf32>
    %11 = vector.shape_cast %10 : vector<1x1x32x128xf32> to vector<32x128xf32>
    %cst_13 = arith.constant dense<0.000000e+00> : vector<16x128xf32>
    %12 = tpu.matmul %9, %11, %cst_13 {dimension_numbers = #tpu.dot_dimension_numbers<[1], [0], [0], [1], [0, 0, 1, 1], [], []>} : vector<16x32xf32>, vector<32x128xf32>, vector<16x128xf32> -> vector<16x128xf32>
    %13 = arith.addf %7, %12 : vector<16x128xf32>
    %c0_14 = arith.constant 0 : index
    %c0_15 = arith.constant 0 : index
    %c0_16 = arith.constant 0 : index
    %14 = vector.load %arg5[%c0_14, %c0_15, %c0_16] : memref<1x1x128xf32, #tpu.memory_space<vmem>>, vector<1x1x128xf32>
    %15 = vector.shape_cast %14 : vector<1x1x128xf32> to vector<1x128xf32>
    %16 = vector.broadcast %15 : vector<1x128xf32> to vector<16x128xf32>
    %17 = arith.addf %13, %16 : vector<16x128xf32>
    %c0_17 = arith.constant 0 : index
    %c0_18 = arith.constant 0 : index
    %18 = vector.load %arg7[%c0_17, %c0_18] : memref<16x128xf32, #tpu.memory_space<vmem>>, vector<16x128xf32>
    tpu.vector_store %arg7[%c0_17, %c0_18], %17 {strides = array<i32>} : memref<16x128xf32, #tpu.memory_space<vmem>>, vector<16x128xf32>,
    %c0_19 = arith.constant 0 : index
    %c0_20 = arith.constant 0 : index
    %c0_21 = arith.constant 0 : index
    %19 = vector.load %arg4[%c0_19, %c0_20, %c0_21] : memref<1x32x128xf32, #tpu.memory_space<vmem>>, vector<1x32x128xf32>
    %20 = vector.shape_cast %19 : vector<1x32x128xf32> to vector<32x128xf32>
    %c0_22 = arith.constant 0 : index
    %c0_23 = arith.constant 0 : index
    %21 = vector.load %arg8[%c0_22, %c0_23] : memref<2x32xf32, #tpu.memory_space<vmem>>, vector<2x32xf32>
    %c0_24 = arith.constant 0 : index
    %c0_25 = arith.constant 0 : index
    %22 = vector.load %arg9[%c0_24, %c0_25] : memref<2x32xf32, #tpu.memory_space<vmem>>, vector<2x32xf32>
    %c0_i32_26 = arith.constant 0 : i32
    %c0_i32_27 = arith.constant 0 : i32
    %c8_i32 = arith.constant 8 : i32
    %23 = arith.addi %c0_i32_27, %c8_i32 : i32
    %c1_i32 = arith.constant 1 : i32
    %24:2 = scf.for %arg10 = %c0_i32_27 to %23 step %c1_i32 iter_args(%arg11 = %21, %arg12 = %22) -> (vector<2x32xf32>, vector<2x32xf32>)  : i32 {
      %c2_i32 = arith.constant 2 : i32
      %27 = arith.muli %c2_i32, %arg10 : i32
      %c7_i32 = arith.constant 7 : i32
      %28 = arith.subi %c7_i32, %27 : i32
      %29 = arith.muli %arg0, %28 : i32
      %30 = arith.addi %arg10, %29 : i32
      %c2_i32_33 = arith.constant 2 : i32
      %31 = arith.muli %30, %c2_i32_33 : i32
      %32 = tpu.assume_multiple %31, 2 : i32
      %33 = arith.index_cast %32 : i32 to index
      %c0_34 = arith.constant 0 : index
      %34 = vector.load %arg7[%33, %c0_34] : memref<16x128xf32, #tpu.memory_space<vmem>>, vector<2x128xf32>
      %cst_35 = arith.constant dense<0.000000e+00> : vector<2x128xf32>
      %35 = tpu.matmul %arg11, %20, %cst_35 {dimension_numbers = #tpu.dot_dimension_numbers<[1], [0], [0], [1], [0, 0, 1, 1], [], []>} : vector<2x32xf32>, vector<32x128xf32>, vector<2x128xf32> -> vector<2x128xf32>
      %36 = arith.addf %34, %35 : vector<2x128xf32>
      %37 = vector.extract_strided_slice %36 {offsets = [0, 0], sizes = [2, 32], strides = [1, 1]} : vector<2x128xf32> to vector<2x32xf32>
      %38 = arith.negf %37 : vector<2x32xf32>
      %39 = math.exp %38 : vector<2x32xf32>
      %cst_36 = arith.constant 1.000000e+00 : f32
      %40 = vector.broadcast %cst_36 : f32 to vector<2x32xf32>
      %41 = arith.addf %40, %39 : vector<2x32xf32>
      %42 = arith.divf %40, %41 : vector<2x32xf32>
      %43 = vector.extract_strided_slice %36 {offsets = [0, 32], sizes = [2, 32], strides = [1, 1]} : vector<2x128xf32> to vector<2x32xf32>
      %44 = arith.negf %43 : vector<2x32xf32>
      %45 = math.exp %44 : vector<2x32xf32>
      %cst_37 = arith.constant 1.000000e+00 : f32
      %46 = vector.broadcast %cst_37 : f32 to vector<2x32xf32>
      %47 = arith.addf %46, %45 : vector<2x32xf32>
      %48 = arith.divf %46, %47 : vector<2x32xf32>
      %49 = vector.extract_strided_slice %36 {offsets = [0, 64], sizes = [2, 32], strides = [1, 1]} : vector<2x128xf32> to vector<2x32xf32>
      %50 = math.tanh %49 : vector<2x32xf32>
      %51 = vector.extract_strided_slice %36 {offsets = [0, 96], sizes = [2, 32], strides = [1, 1]} : vector<2x128xf32> to vector<2x32xf32>
      %52 = arith.negf %51 : vector<2x32xf32>
      %53 = math.exp %52 : vector<2x32xf32>
      %cst_38 = arith.constant 1.000000e+00 : f32
      %54 = vector.broadcast %cst_38 : f32 to vector<2x32xf32>
      %55 = arith.addf %54, %53 : vector<2x32xf32>
      %56 = arith.divf %54, %55 : vector<2x32xf32>
      %57 = arith.mulf %48, %arg12 : vector<2x32xf32>
      %58 = arith.mulf %42, %50 : vector<2x32xf32>
      %59 = arith.addf %57, %58 : vector<2x32xf32>
      %60 = math.tanh %59 : vector<2x32xf32>
      %61 = arith.mulf %56, %60 : vector<2x32xf32>
      %c0_i32_39 = arith.constant 0 : i32
      %c0_i32_40 = arith.constant 0 : i32
      %c0_i32_41 = arith.constant 0 : i32
      %62 = tpu.memref_slice %arg6[%c0_i32_26, %c0_i32_39, %c0_i32_40, %c0_i32_41] : memref<1x8x2x32xf32, #tpu.memory_space<vmem>> -> memref<1x8x2x32xf32, #tpu.memory_space<vmem>>
      %63 = tpu.memref_squeeze %62 : memref<1x8x2x32xf32, #tpu.memory_space<vmem>> -> memref<8x2x32xf32, #tpu.memory_space<vmem>>
      %64 = arith.index_cast %30 : i32 to index
      %c0_42 = arith.constant 0 : index
      %c0_43 = arith.constant 0 : index
      %65 = vector.load %63[%64, %c0_42, %c0_43] : memref<8x2x32xf32, #tpu.memory_space<vmem>>, vector<1x2x32xf32>
      %66 = vector.shape_cast %65 : vector<1x2x32xf32> to vector<2x32xf32>
      %67 = vector.shape_cast %61 : vector<2x32xf32> to vector<1x2x32xf32>
      tpu.vector_store %63[%64, %c0_42, %c0_43], %67 {strides = array<i32>} : memref<8x2x32xf32, #tpu.memory_space<vmem>>, vector<1x2x32xf32>,
      scf.yield %61, %59 : vector<2x32xf32>, vector<2x32xf32>
    }
    %c8_i32_28 = arith.constant 8 : i32
    %c0_29 = arith.constant 0 : index
    %c0_30 = arith.constant 0 : index
    %25 = vector.load %arg8[%c0_29, %c0_30] : memref<2x32xf32, #tpu.memory_space<vmem>>, vector<2x32xf32>
    tpu.vector_store %arg8[%c0_29, %c0_30], %24#0 {strides = array<i32>} : memref<2x32xf32, #tpu.memory_space<vmem>>, vector<2x32xf32>,
    %c0_31 = arith.constant 0 : index
    %c0_32 = arith.constant 0 : index
    %26 = vector.load %arg9[%c0_31, %c0_32] : memref<2x32xf32, #tpu.memory_space<vmem>>, vector<2x32xf32>
    tpu.vector_store %arg9[%c0_31, %c0_32], %24#1 {strides = array<i32>} : memref<2x32xf32, #tpu.memory_space<vmem>>, vector<2x32xf32>,
    return
  }
  func.func @transform_0(%arg0: i32, %arg1: i32) -> (i32, i32, i32) {
    %c2_i32 = arith.constant 2 : i32
    %0 = arith.muli %c2_i32, %arg1 : i32
    %c0_i32 = arith.constant 0 : i32
    %1 = arith.subi %c0_i32, %0 : i32
    %2 = arith.muli %arg0, %1 : i32
    %3 = arith.addi %arg1, %2 : i32
    %c0_i32_0 = arith.constant 0 : i32
    %c0_i32_1 = arith.constant 0 : i32
    %c0_i32_2 = arith.constant 0 : i32
    return %c0_i32_0, %3, %c0_i32_1 : i32, i32, i32
  }
  func.func @transform_1(%arg0: i32, %arg1: i32) -> (i32, i32, i32, i32) {
    %c0_i32 = arith.constant 0 : i32
    %c0_i32_0 = arith.constant 0 : i32
    %c0_i32_1 = arith.constant 0 : i32
    %c0_i32_2 = arith.constant 0 : i32
    return %arg0, %c0_i32, %c0_i32_0, %c0_i32_1 : i32, i32, i32, i32
  }
  func.func @transform_2(%arg0: i32, %arg1: i32) -> (i32, i32, i32) {
    %c0_i32 = arith.constant 0 : i32
    %c0_i32_0 = arith.constant 0 : i32
    %c0_i32_1 = arith.constant 0 : i32
    return %arg0, %c0_i32, %c0_i32_0 : i32, i32, i32
  }
  func.func @transform_3(%arg0: i32, %arg1: i32) -> (i32, i32, i32) {
    %c0_i32 = arith.constant 0 : i32
    %c0_i32_0 = arith.constant 0 : i32
    %c0_i32_1 = arith.constant 0 : i32
    return %arg0, %c0_i32, %c0_i32_0 : i32, i32, i32
  }
  func.func @transform_4(%arg0: i32, %arg1: i32) -> (i32, i32, i32, i32) {
    %c2_i32 = arith.constant 2 : i32
    %0 = arith.muli %c2_i32, %arg1 : i32
    %c0_i32 = arith.constant 0 : i32
    %1 = arith.subi %c0_i32, %0 : i32
    %2 = arith.muli %arg0, %1 : i32
    %3 = arith.addi %arg1, %2 : i32
    %c0_i32_0 = arith.constant 0 : i32
    %c0_i32_1 = arith.constant 0 : i32
    %c0_i32_2 = arith.constant 0 : i32
    return %arg0, %3, %c0_i32_0, %c0_i32_1 : i32, i32, i32, i32
  }
}

</mosaic_0001>

<bundles_post_ra>
// kernel: stacked_brnn_forward.3
= control target key start
LH: loop header
LB: loop body
LE: loop exit
PB: predicated region body
PF: predicated region fallthrough
CT: control target
= control target key end

     0   :  { %s1023_s15 = smov 0   ;;  %s1025_s16 = smov 0   ;;  %s1137_s0 = inlined_call_operand.vmem [shape: f32[2,16,32], index: 0, kind: input, shape index: {}]   ;;  %s1138_s1 = inlined_call_operand.vmem [shape: f32[2,2,32,128], index: 1, kind: input, shape index: {}]   ;;  %s1139_s2 = inlined_call_operand.vmem [shape: f32[2,32,128], index: 2, kind: input, shape index: {}]   ;;  %s1140_s3 = inlined_call_operand.vmem [shape: f32[2,1,128], index: 3, kind: input, shape index: {}]   ;;  %s1141_s4 = inlined_call_operand.vmem [shape: f32[2,8,2,32], index: 4, kind: output, shape index: {}]  }
   0x1   :  { %s1027_s17 = smov 0  }
   0x2 LB: > { %s26_s18 = sadd.s32 1, %s974_s16  ;;  %p805_p0 = scmp.ge.s32.totalorder %s978_s17, 1  ;;  %s978_s17 = sphi %s1027_s17, %s14_s17   ;;  %s974_s16 = sphi %s1025_s16, %s1145_s16   ;;  %s970_s15 = sphi %s1023_s15, %s1144_s15  }
   0x3   : > { %p28_p1 = scmp.ge.s32.totalorder %s26_s18, 2  ;;  %p229_p2 = scmp.lt.s32.totalorder %s978_s17, 3 }
   0x5   : > { %s1147_s18 = smov (%p28_p1, %s26_s18), 0  ;;  %p230_p3 = pnand %p805_p0, %p229_p2 }
   0x6   : > { %p294_p4 = scmp.lt.s32.totalorder (!%p230_p3), %s970_s15, 1  ;;  %s1095_s21 = smov (!%p230_p3), 0  }
   0x7   : > { %233 = sbr.rel (%p230_p3) target bundleno = 926 (0x39e), region = 36 }
   0xc   : > { %vm329_vm0 = vcmask 254976   ;;  %v812_v0 = vld [vmem:[%s1137_s0 + $0x10] sm:$0xff]  ;;  %vm346_vm1 = vcmask 261120   ;;  %v332_v1 = vld [vmem:[%s1137_s0] sm:$0xff]  ;;  %v992_v2 = vmov 0.0   ;;  %s1055_s23 = scalar_select %p294_p4, %s970_s15, 1 }
   0xd   : > { %330 = vst.msk [vmem:[#allocation3] sm:$0x3] %vm329_vm0, %v992_v2  ;;  %331 = vst.msk [vmem:[#allocation4] sm:$0x3] %vm329_vm0, %v992_v2  ;;  %857 = vmatprep.mubr.msk.f32.mxu0 %vm346_vm1, %v812_v0  ;;  %868 = vmatprep.mubr.msk.f32.mxu1 %vm346_vm1, %v332_v1  ;;  %v813_v15 = vld [vmem:[%s1137_s0 + $0x18] sm:$0xff]  ;;  %v333_v16 = vld [vmem:[%s1137_s0 + $0x8] sm:$0xff] }
   0xe   : > { %s829_s24 = sshll.u32 %s1055_s23, 6  ;;  %s830_s25 = sshll.u32 %s1055_s23, 5 }
   0xf   : > { %s298_s28 = scalar_lea.vmem %s1138_s1, %s829_s24  ;;  %s303_s5 = scalar_lea.vmem %s1139_s2, %s830_s25 }
  0x10   : > { %s831_s6 = sshll.u32 %s1055_s23, 4  ;;  %v817_v3 = vld [vmem:[%s298_s28 + $0x38] sm:$0xff]  ;;  %v1066_v4 = vld [vmem:[%s303_s5] sm:$0xff]  ;;  %v1068_v5 = vld [vmem:[%s303_s5 + $0x8] sm:$0xff]  ;;  %s306_s20 = scalar_lea.vmem %s1140_s3, %s1055_s23 }
  0x11   : > { %s1073_s9 = scalar_lea.vmem %s1141_s4, %s831_s6  ;;  %849 = vmatprep.subr.mxu0 %v817_v3  ;;  %v1075_v6 = vld [vmem:[%s303_s5 + $0x10] sm:$0xff]  ;;  %v1077_v7 = vld [vmem:[%s303_s5 + $0x18] sm:$0xff]  ;;  %v815_v11 = vld [vmem:[%s298_s28 + $0x28] sm:$0xff] }
  0x12   : > { %v337_v8 = vld [vmem:[%s298_s28 + $0x18] sm:$0xff]  ;;  %850 = vmatpush3.msra.mxu0 %v817_v3  ;;  %v816_v9 = vld [vmem:[%s298_s28 + $0x30] sm:$0xff]  ;;  %v335_v12 = vld [vmem:[%s298_s28 + $0x8] sm:$0xff] }
  0x13   : > { %860 = vmatprep.subr.mxu1 %v337_v8  ;;  %v336_v10 = vld [vmem:[%s298_s28 + $0x10] sm:$0xff]  ;;  %851 = vmatprep.subr.mxu0 %v816_v9  ;;  %v814_v13 = vld [vmem:[%s298_s28 + $0x20] sm:$0xff] }
  0x14   : > { %861 = vmatpush3.msra.mxu1 %v337_v8  ;;  %852 = vmatpush3.msra.mxu0 %v816_v9  ;;  %v334_v14 = vld [vmem:[%s298_s28] sm:$0xff]  ;;  %v524_v17 = vld [vmem:[#allocation3] sm:$0x3]   ;;  %v525_v18 = vld [vmem:[#allocation4] sm:$0x3]  }
  0x15   : > { %862 = vmatprep.subr.mxu1 %v336_v10  ;;  %853 = vmatprep.subr.mxu0 %v815_v11  ;;  %v822_v21 = vld [vmem:[%s306_s20] ss:$0 sm:$0xff] }
  0x16   : > { %863 = vmatpush3.msra.mxu1 %v336_v10  ;;  %854 = vmatpush3.msra.mxu0 %v815_v11 }
  0x17   : > { %864 = vmatprep.subr.mxu1 %v335_v12  ;;  %855 = vmatprep.subr.mxu0 %v814_v13 }
  0x18   : > { %865 = vmatpush3.msra.mxu1 %v335_v12  ;;  %856 = vmatpush3.msra.mxu0 %v814_v13 }
  0x19   : > { %866 = vmatprep.subr.mxu1 %v334_v14  ;;  %858 = vmatmul.mubr.msk.f32.vlgmr.msra.gmra.mxu0 %vm346_vm1, %v813_v15 }
  0x1a   : > { %867 = vmatpush3.msra.mxu1 %v334_v14 }
  0x1b   : > { %869 = vmatmul.mubr.msk.f32.vlgmr.msra.gmra.mxu1 %vm346_vm1, %v333_v16 }
  0xd9   : > { %v859_v19 = vpop.f32.mrf.mxu0 }
  0xdb   : > { %v870_v20 = vpop.f32.mrf.mxu1  ;;  %v419_v23 = vpop.f32.mrf.mxu0 }
  0xdc   : > { %v506_v22 = vadd.f32 %v870_v20, %v859_v19 }
  0xdd   : > { %v500_v24 = vpop.f32.mrf.mxu1 }
  0xde   : > { %v517_v25 = vadd.f32 %v822_v21, %v506_v22  ;;  %v501_v26 = vadd.f32 %v500_v24, %v419_v23 }
  0xe0   : > { %519 = vst [vmem:[#allocation2 + $0x8] sm:$0xff] %v517_v25  ;;  %v516_v27 = vadd.f32 %v822_v21, %v501_v26 }
  0xe2   : > { %518 = vst [vmem:[#allocation2] sm:$0xff] %v516_v27 }
  0xe3 LB: >> { %v993_v28 = vmov 0.0   ;;  %vm994_vm2 = vmmov 0   ;;  %s823_s22 = sshll.u32 %s990_s21, 1  ;;  %s995_s28 = smov 64   ;;  %s990_s21 = sphi %s1095_s21, %s531_s21   ;;  %v986_v17 = vphi %v524_v17, %v1143_v17   ;;  %v982_v18 = vphi %v525_v18, %v1142_v18  }
  0xe4   : >> { %871 = vmatprep.subr.mxu0 %v993_v28  ;;  %879 = vmatprep.mubr.msk.f32.mxu0 %vm994_vm2, %v993_v28  ;;  %s535_s23 = ssub.s32 7, %s823_s22  ;;  %s996_s29 = smov 32  }
  0xe5   : >> { %872 = vmatpush3.msra.mxu0 %v1077_v7  ;;  %s536_s24 = smul.u32 %s970_s15, %s535_s23  ;;  %s997_s30 = smov 96  }
  0xe6   : >> { %873 = vmatprep.subr.mxu0 %v993_v28 }
  0xe7   : >> { %874 = vmatpush3.msra.mxu0 %v1075_v6  ;;  %s1110_s25 = sadd.s32 %s990_s21, %s536_s24  ;;  %s531_s21 = sadd.s32 1, %s990_s21  }
  0xe8   : >> { %875 = vmatprep.subr.mxu0 %v993_v28  ;;  %s824_s26 = sshll.u32 %s1110_s25, 1  ;;  %p528_p5 = scmp.ge.s32.totalorder %s531_s21, 8  }
  0xe9   : >> { %876 = vmatpush3.msra.mxu0 %v1068_v5  ;;  %s539_s27 = scalar_lea.vmem [#allocation2], %s824_s26  ;;  %s647_s5 = scalar_lea.vmem %s1073_s9, %s824_s26 }
  0xea   : >> { %877 = vmatprep.subr.mxu0 %v993_v28  ;;  %v540_v29 = vld [vmem:[%s539_s27] sm:$0x3] }
  0xeb   : >> { %878 = vmatpush3.msra.mxu0 %v1066_v4 }
  0xec   : >> { %880 = vmatmul.mubr.msk.f32.vlgmr.msra.gmra.mxu0 %vm346_vm1, %v986_v17 }
 0x1ac   : >> { %v610_v30 = vpop.f32.mrf.mxu0 }
 0x1ad   : >> { %v614_v31 = vadd.f32 %v610_v30, %v540_v29 }
 0x1ae   : >> { %v881_v32 = vpop.f32.mrf.mxu0 }
 0x1af   : >> { %936 = vtanh.f32 %v614_v31  ;;  %v826_v34 = vmul.f32 -1.442695, %v614_v31 }
 0x1b1   : >> { %938 = vpow2.f32 %v826_v34 }
 0x1bc   : >> { %v937_v33 = vpop.eup %936 }
 0x1bd   : >> { %628 = vrot.lane.b32.xlu0 %v937_v33, %s995_s28 }
 0x1be   : >> { %v939_v35 = vpop.eup %938 }
 0x1bf   : >> { %v618_v36 = vadd.f32 1.0, %v939_v35 }
 0x1c1   : >> { %623 = vrot.lane.b32.xlu0 %v982_v18, %s996_s29  ;;  %940 = vrcp.f32 %v618_v36 }
 0x1ce   : >> { %v941_v37 = vpop.eup %940 }
 0x22f   : >> { %v629_v38 = vpop.permute.xlu0 %628 }
 0x230   : >> { %v631_v39 = vmul.f32 %v941_v37, %v629_v38 }
 0x232   : >> { %633 = vrot.lane.b32.xlu1 %v631_v39, %s996_s29 }
 0x233   : >> { %v624_v40 = vpop.permute.xlu0 %623 }
 0x234   : >> { %v626_v41 = vmul.f32 %v941_v37, %v624_v40 }
 0x2a4   : >> { %v634_v42 = vpop.permute.xlu1 %633 }
 0x2a5   : >> { %v636_v43 = vadd.f32 %v634_v42, %v626_v41 }
 0x2a7   : >> { %942 = vtanh.f32 %v636_v43 }
 0x2b4   : >> { %v943_v44 = vpop.eup %942 }
 0x2b5   : >> { %639 = vrot.lane.b32.xlu1 %v943_v44, %s995_s28 }
 0x2b9   : >> { %651 = vrot.lane.b32.xlu1 %v636_v43, %s997_s30 }
 0x327   : >> { %v640_v45 = vpop.permute.xlu1 %639 }
 0x328   : >> { %v642_v46 = vmul.f32 %v941_v37, %v640_v45 }
 0x32a   : >> { %644 = vrot.lane.b32.xlu0 %v642_v46, %s996_s29 }
 0x32b   : >> { %v652_v47 = vpop.permute.xlu1 %651  }
 0x32c   : >> { %v1142_v18 = vmov %v652_v47  ;;  %656 = vst.msk [vmem:[#allocation4] sm:$0x3] (%p528_p5), %vm329_vm0, %v652_v47 }
 0x399   : > { %530 = sbr.rel (!%p528_p5) target bundleno = 227 (0xe3), region = 90 }
 0x39c   : >> { %v645_v48 = vpop.permute.xlu0 %644  }
 0x39d   : >> { %649 = vst.msk [vmem:[%s647_s5] sm:$0x3] %vm329_vm0, %v645_v48  ;;  %v1143_v17 = vmov %v645_v48  ;;  %655 = vst.msk [vmem:[#allocation3] sm:$0x3] (%p528_p5), %vm329_vm0, %v645_v48 }
 0x39e PF: > { %s14_s17 = sadd.s32 1, %s978_s17   ;;  %s1144_s15 = smov %s974_s16 }
 0x39f   : > { %p11_p6 = scmp.ge.s32.totalorder %s14_s17, 4   ;;  %s1145_s16 = smov %s1147_s18 }
 0x3a1   :  { %13 = sbr.rel (!%p11_p6) target bundleno = 2 (0x2), region = 101 }

// kernel: stacked_brnn_forward.2
= control target key start
LH: loop header
LB: loop body
LE: loop exit
PB: predicated region body
PF: predicated region fallthrough
CT: control target
= control target key end

     0   :  { %s900_s15 = smov 0   ;;  %s902_s16 = smov 0   ;;  %s999_s0 = inlined_call_operand.vmem [shape: f32[1,16,16], index: 0, kind: input, shape index: {}]   ;;  %s1000_s1 = inlined_call_operand.vmem [shape: f32[2,1,16,128], index: 1, kind: input, shape index: {}]   ;;  %s1001_s2 = inlined_call_operand.vmem [shape: f32[2,32,128], index: 2, kind: input, shape index: {}]   ;;  %s1002_s3 = inlined_call_operand.vmem [shape: f32[2,1,128], index: 3, kind: input, shape index: {}]   ;;  %s1003_s4 = inlined_call_operand.vmem [shape: f32[2,8,2,32], index: 4, kind: output, shape index: {}]  }
   0x1   :  { %s904_s17 = smov 0  }
   0x2 LB: > { %s26_s18 = sadd.s32 1, %s851_s16  ;;  %p713_p0 = scmp.ge.s32.totalorder %s855_s17, 1  ;;  %s855_s17 = sphi %s904_s17, %s14_s17   ;;  %s851_s16 = sphi %s902_s16, %s1007_s16   ;;  %s847_s15 = sphi %s900_s15, %s1006_s15  }
   0x3   : > { %p28_p1 = scmp.ge.s32.totalorder %s26_s18, 2  ;;  %p229_p2 = scmp.lt.s32.totalorder %s855_s17, 3 }
   0x5   : > { %s1009_s18 = smov (%p28_p1, %s26_s18), 0  ;;  %p230_p3 = pnand %p713_p0, %p229_p2 }
   0x6   : > { %p294_p4 = scmp.lt.s32.totalorder (!%p230_p3), %s847_s15, 1  ;;  %s958_s12 = smov (!%p230_p3), 0  }
   0x7   : > { %233 = sbr.rel (%p230_p3) target bundleno = 918 (0x396), region = 36 }
   0xc   : > { %vm329_vm0 = vcmask 254976   ;;  %v332_v0 = vld [vmem:[%s999_s0] sm:$0xff]  ;;  %vm343_vm1 = vcmask 130048   ;;  %v869_v1 = vmov 0.0   ;;  %s295_s21 = scalar_select %p294_p4, %s847_s15, 1  ;;  %v333_v8 = vld [vmem:[%s999_s0 + $0x8] sm:$0xff] }
   0xd   : > { %330 = vst.msk [vmem:[#allocation3] sm:$0x3] %vm329_vm0, %v869_v1  ;;  %331 = vst.msk [vmem:[#allocation4] sm:$0x3] %vm329_vm0, %v869_v1  ;;  %745 = vmatprep.mubr.msk.f32.mxu0 %vm343_vm1, %v332_v0 }
   0xe   : > { %s729_s22 = sshll.u32 %s295_s21, 4  ;;  %s730_s23 = sshll.u32 %s295_s21, 5 }
   0xf   : > { %s298_s26 = scalar_lea.vmem %s1000_s1, %s729_s22  ;;  %s303_s29 = scalar_lea.vmem %s1001_s2, %s730_s23 }
  0x10   : > { %s937_s6 = scalar_lea.vmem %s1003_s4, %s729_s22  ;;  %v335_v2 = vld [vmem:[%s298_s26 + $0x8] sm:$0xff]  ;;  %v939_v3 = vld [vmem:[%s303_s29] sm:$0xff]  ;;  %v943_v5 = vld [vmem:[%s303_s29 + $0x10] sm:$0xff]  ;;  %s306_s11 = scalar_lea.vmem %s1002_s3, %s295_s21 }
  0x11   : > { %v941_v4 = vld [vmem:[%s303_s29 + $0x8] sm:$0xff]  ;;  %741 = vmatprep.subr.mxu0 %v335_v2  ;;  %v945_v6 = vld [vmem:[%s303_s29 + $0x18] sm:$0xff]  ;;  %v334_v7 = vld [vmem:[%s298_s26] sm:$0xff] }
  0x12   : > { %742 = vmatpush3.msra.mxu0 %v335_v2  ;;  %v720_v11 = vld [vmem:[%s306_s11] ss:$0 sm:$0xff] }
  0x13   : > { %743 = vmatprep.subr.mxu0 %v334_v7 }
  0x14   : > { %744 = vmatpush3.msra.mxu0 %v334_v7  ;;  %v431_v9 = vld [vmem:[#allocation3] sm:$0x3]   ;;  %v432_v10 = vld [vmem:[#allocation4] sm:$0x3]  }
  0x15   : > { %746 = vmatmul.mubr.msk.f32.vlgmr.msra.gmra.mxu0 %vm343_vm1, %v333_v8 }
  0xd5   : > { %v747_v12 = vpop.f32.mrf.mxu0 }
  0xd6   : > { %v422_v13 = vadd.f32 %v747_v12, %v720_v11 }
  0xd7   : > { %v416_v14 = vpop.f32.mrf.mxu0 }
  0xd8   : > { %426 = vst [vmem:[#allocation2 + $0x8] sm:$0xff] %v422_v13  ;;  %v417_v15 = vadd.f32 %v720_v11, %v416_v14 }
  0xda   : > { %425 = vst [vmem:[#allocation2] sm:$0xff] %v417_v15 }
  0xdb LB: >> { %v870_v16 = vmov 0.0   ;;  %vm871_vm2 = vmmov 0   ;;  %vm448_vm3 = vcmask 261120   ;;  %s723_s13 = sshll.u32 %s867_s12, 1  ;;  %s872_s23 = smov 64   ;;  %s867_s12 = sphi %s958_s12, %s438_s12   ;;  %v863_v9 = vphi %v431_v9, %v1005_v9   ;;  %v859_v10 = vphi %v432_v10, %v1004_v10  }
  0xdc   : >> { %748 = vmatprep.subr.mxu0 %v870_v16  ;;  %756 = vmatprep.mubr.msk.f32.mxu0 %vm871_vm2, %v870_v16  ;;  %s442_s14 = ssub.s32 7, %s723_s13  ;;  %s873_s24 = smov 32  }
  0xdd   : >> { %749 = vmatpush3.msra.mxu0 %v945_v6  ;;  %s443_s19 = smul.u32 %s847_s15, %s442_s14  ;;  %s874_s25 = smov 96  }
  0xde   : >> { %750 = vmatprep.subr.mxu0 %v870_v16 }
  0xdf   : >> { %751 = vmatpush3.msra.mxu0 %v943_v5  ;;  %s972_s20 = sadd.s32 %s867_s12, %s443_s19  ;;  %s438_s12 = sadd.s32 1, %s867_s12  }
  0xe0   : >> { %752 = vmatprep.subr.mxu0 %v870_v16  ;;  %s724_s21 = sshll.u32 %s972_s20, 1  ;;  %p435_p5 = scmp.ge.s32.totalorder %s438_s12, 8  }
  0xe1   : >> { %753 = vmatpush3.msra.mxu0 %v941_v4  ;;  %s446_s22 = scalar_lea.vmem [#allocation2], %s724_s21  ;;  %s555_s26 = scalar_lea.vmem %s937_s6, %s724_s21 }
  0xe2   : >> { %754 = vmatprep.subr.mxu0 %v870_v16  ;;  %v447_v17 = vld [vmem:[%s446_s22] sm:$0x3] }
  0xe3   : >> { %755 = vmatpush3.msra.mxu0 %v939_v3 }
  0xe4   : >> { %757 = vmatmul.mubr.msk.f32.vlgmr.msra.gmra.mxu0 %vm448_vm3, %v863_v9 }
 0x1a4   : >> { %v518_v18 = vpop.f32.mrf.mxu0 }
 0x1a5   : >> { %v522_v19 = vadd.f32 %v518_v18, %v447_v17 }
 0x1a6   : >> { %v758_v20 = vpop.f32.mrf.mxu0 }
 0x1a7   : >> { %813 = vtanh.f32 %v522_v19  ;;  %v726_v22 = vmul.f32 -1.442695, %v522_v19 }
 0x1a9   : >> { %815 = vpow2.f32 %v726_v22 }
 0x1b4   : >> { %v814_v21 = vpop.eup %813 }
 0x1b5   : >> { %536 = vrot.lane.b32.xlu0 %v814_v21, %s872_s23 }
 0x1b6   : >> { %v816_v23 = vpop.eup %815 }
 0x1b7   : >> { %v526_v24 = vadd.f32 1.0, %v816_v23 }
 0x1b9   : >> { %531 = vrot.lane.b32.xlu0 %v859_v10, %s873_s24  ;;  %817 = vrcp.f32 %v526_v24 }
 0x1c6   : >> { %v818_v25 = vpop.eup %817 }
 0x227   : >> { %v537_v26 = vpop.permute.xlu0 %536 }
 0x228   : >> { %v539_v27 = vmul.f32 %v818_v25, %v537_v26 }
 0x22a   : >> { %541 = vrot.lane.b32.xlu1 %v539_v27, %s873_s24 }
 0x22b   : >> { %v532_v28 = vpop.permute.xlu0 %531 }
 0x22c   : >> { %v534_v29 = vmul.f32 %v818_v25, %v532_v28 }
 0x29c   : >> { %v542_v30 = vpop.permute.xlu1 %541 }
 0x29d   : >> { %v544_v31 = vadd.f32 %v542_v30, %v534_v29 }
 0x29f   : >> { %819 = vtanh.f32 %v544_v31 }
 0x2ac   : >> { %v820_v32 = vpop.eup %819 }
 0x2ad   : >> { %547 = vrot.lane.b32.xlu1 %v820_v32, %s872_s23 }
 0x2b1   : >> { %559 = vrot.lane.b32.xlu1 %v544_v31, %s874_s25 }
 0x31f   : >> { %v548_v33 = vpop.permute.xlu1 %547 }
 0x320   : >> { %v550_v34 = vmul.f32 %v818_v25, %v548_v33 }
 0x322   : >> { %552 = vrot.lane.b32.xlu0 %v550_v34, %s873_s24 }
 0x323   : >> { %v560_v35 = vpop.permute.xlu1 %559  }
 0x324   : >> { %v1004_v10 = vmov %v560_v35  ;;  %564 = vst.msk [vmem:[#allocation4] sm:$0x3] (%p435_p5), %vm329_vm0, %v560_v35 }
 0x391   : > { %437 = sbr.rel (!%p435_p5) target bundleno = 219 (0xdb), region = 88 }
 0x394   : >> { %v553_v36 = vpop.permute.xlu0 %552  }
 0x395   : >> { %557 = vst.msk [vmem:[%s555_s26] sm:$0x3] %vm329_vm0, %v553_v36  ;;  %v1005_v9 = vmov %v553_v36  ;;  %563 = vst.msk [vmem:[#allocation3] sm:$0x3] (%p435_p5), %vm329_vm0, %v553_v36 }
 0x396 PF: > { %s14_s17 = sadd.s32 1, %s855_s17   ;;  %s1006_s15 = smov %s851_s16 }
 0x397   : > { %p11_p6 = scmp.ge.s32.totalorder %s14_s17, 4   ;;  %s1007_s16 = smov %s1009_s18 }
 0x399   :  { %13 = sbr.rel (!%p11_p6) target bundleno = 2 (0x2), region = 99 }

</bundles_post_ra>
